<compile_context>
chip_gen: v6e
topology: v6e:2x2x1
jax: 0.10.0
libtpu: 0.0.40
codegen_flags: <defaults>
</compile_context>

<pallas_src>
import functools

import jax
import jax.numpy as jnp
from jax import lax
from jax.experimental import pallas as pl
from jax.experimental.pallas import tpu as pltpu

LANE = 128
SUBLANE = 8


def _round_up(x, m):
    return ((x + m - 1) // m) * m


def _pick_tb(batch):
    """Rows per batch tile: as large as possible (<=128, MXU fill) while keeping
    at least two grid tiles when the batch allows (feeds both v7x TensorCores)."""
    b8 = _round_up(batch, SUBLANE)
    if b8 <= SUBLANE:
        return SUBLANE
    half = _round_up((b8 + 1) // 2, SUBLANE)
    return int(min(128, half))


# --------------------------------------------------------------------------
# Path A: embedding table resident in VMEM (small vocab) — no DMAs at all.
# --------------------------------------------------------------------------
def _fasttext_vmem_kernel(ids_ref, emb_ref, w_ref, b_ref, out_ref, acc_ref,
                          *, seq, tb, b_pad):
    """ids_ref : [seq*b_pad] int32, SMEM (scalar prefetch), seq-major
       emb_ref : [v_pad, d_pad] f32, VMEM (whole table, constant block)
       w_ref   : [d_pad, o_pad] bf16, VMEM (fc weight, 1/seq folded in)
       b_ref   : [1, o_pad]     f32,  VMEM
       out_ref : [tb, o_pad]    f32,  VMEM
       acc_ref : [tb, d_pad]    f32,  VMEM scratch (pooled row sums)"""
    base = pl.program_id(0) * tb
    d_pad = acc_ref.shape[1]

    @pl.loop(0, tb)
    def _row(r):
        def body(s, row_sum):
            tok = ids_ref[s * b_pad + base + r]
            return row_sum + emb_ref[pl.ds(tok, 1), :]   # in-VMEM dynamic row read

        acc_ref[pl.ds(r, 1), :] = lax.fori_loop(
            0, seq, body, jnp.zeros((1, d_pad), jnp.float32))

    # Single bf16 MXU pass; f32 accumulate; bias added once per tile.
    y = jnp.dot(acc_ref[...].astype(jnp.bfloat16), w_ref[...],
                preferred_element_type=jnp.float32)
    out_ref[...] = y + b_ref[...]


# --------------------------------------------------------------------------
# Path B: table stays in HBM — per-row DMA gather streamed slab-by-slab.
# --------------------------------------------------------------------------
def _fasttext_hbm_kernel(ids_ref, emb_hbm, w_ref, b_ref, out_ref,
                         gbuf_ref, acc_ref, sem_ref,
                         *, seq, tb, b_pad, pad_id):
    """gbuf_ref: [2, tb, d_pad] f32 VMEM — 2-slot slab double buffer
       acc_ref : [tb, d_pad]    f32 VMEM — pooled sums
       sem_ref : DMA semaphores, shape (2*tb,) — per (slot, row)

    Pad tokens (and fully padded batch rows) skip the DMA: the nn.Embedding
    padding_idx row is all-zero, so zeros are written to the slab instead."""
    base = pl.program_id(0) * tb
    d_pad = gbuf_ref.shape[-1]

    def issue_slab(s, slot):
        off = s * b_pad + base

        @pl.loop(0, tb)
        def _issue(r):
            tok = ids_ref[off + r]

            @pl.when(tok != pad_id)
            def _():
                pltpu.make_async_copy(
                    emb_hbm.at[pl.ds(tok, 1), :],
                    gbuf_ref.at[slot, pl.ds(r, 1), :],
                    sem_ref.at[slot * tb + r],
                ).start()

            @pl.when(tok == pad_id)
            def _():
                gbuf_ref[slot, pl.ds(r, 1), :] = jnp.zeros((1, d_pad), jnp.float32)

    def wait_slab(s, slot):
        off = s * b_pad + base

        @pl.loop(0, tb)
        def _wait(r):
            tok = ids_ref[off + r]

            @pl.when(tok != pad_id)
            def _():
                # Dummy src slice only sets the transfer size; dst/sem match issue.
                pltpu.make_async_copy(
                    emb_hbm.at[pl.ds(0, 1), :],
                    gbuf_ref.at[slot, pl.ds(r, 1), :],
                    sem_ref.at[slot * tb + r],
                ).wait()

    issue_slab(0, 0)                       # get slab 0 in flight first
    acc_ref[...] = jnp.zeros_like(acc_ref)

    @pl.loop(0, seq)
    def _slab(s):
        slot = s & 1
        wait_slab(s, slot)

        @pl.when(s + 1 < seq)
        def _():                            # prefetch next slab under this slab's adds
            issue_slab(s + 1, 1 - slot)

        acc_ref[...] += gbuf_ref[slot]      # mean-pool fused into the drain loop

    y = jnp.dot(acc_ref[...].astype(jnp.bfloat16), w_ref[...],
                preferred_element_type=jnp.float32)
    out_ref[...] = y + b_ref[...]


# --------------------------------------------------------------------------
# Wrapper
# --------------------------------------------------------------------------
def fasttext_forward(text, text_lengths, params, *, pad_idx=0, tb=None,
                     vmem_table_budget_bytes=12 * 1024 * 1024):
    """text: [seq_len, batch] int token ids (PyTorch layout).
    Returns logits [batch, output_dim] float32."""
    del text_lengths  # not used by the reference forward's math

    ids_sb = jnp.asarray(text, jnp.int32)                # [seq, batch]
    seq, batch = ids_sb.shape

    emb = params["embedding"].astype(jnp.float32)        # [vocab, embed]
    w = params["fc_w"].astype(jnp.float32)               # [embed, out]
    b = params["fc_b"].astype(jnp.float32)               # [out]
    vocab, embed = emb.shape
    out_dim = w.shape[1]

    if tb is None:
        tb = _pick_tb(batch)
    d_pad = _round_up(embed, LANE)
    o_pad = _round_up(out_dim, LANE)
    v_pad = _round_up(vocab, SUBLANE)
    b_pad = _round_up(batch, tb)

    # Clip ids once here (vectorized) instead of per-token in-kernel; OOB ids
    # land on the zero-padded tail rows of the table (contribute nothing).
    ids_sb = jnp.clip(ids_sb, 0, v_pad - 1)

    # Lane/sublane-dense padded operands (zero padding contributes nothing).
    emb_p = jnp.zeros((v_pad, d_pad), jnp.float32).at[:vocab, :embed].set(emb)
    # Fold 1/seq mean-pool into the fc weight; store it bf16 (single MXU pass,
    # half the weight VMEM). Bias stays f32 and is added once per tile.
    w_p = jnp.zeros((d_pad, o_pad), jnp.float32).at[:embed, :out_dim].set(w / seq)
    w_p = w_p.astype(jnp.bfloat16)
    b_p = jnp.zeros((1, o_pad), jnp.float32).at[0, :out_dim].set(b)

    # Token ids, seq-major, padded batch rows filled with pad_idx; flat for SMEM.
    ids_p = jnp.full((seq, b_pad), pad_idx, jnp.int32).at[:, :batch].set(ids_sb)
    ids_flat = ids_p.reshape(seq * b_pad)

    grid = (b_pad // tb,)

    # VMEM-resident table fast path: table is double-buffered by the pipeline,
    # so 2*table_bytes must stay well under the ~32 MiB scoped default.
    table_bytes = v_pad * d_pad * 4
    use_vmem_table = table_bytes <= vmem_table_budget_bytes

    if use_vmem_table:
        kernel = functools.partial(_fasttext_vmem_kernel, seq=seq, tb=tb, b_pad=b_pad)
        in_specs = [
            pl.BlockSpec((v_pad, d_pad), lambda i, ids: (0, 0)),   # whole table, constant block
            pl.BlockSpec((d_pad, o_pad), lambda i, ids: (0, 0)),   # fc weight (bf16)
            pl.BlockSpec((1, o_pad), lambda i, ids: (0, 0)),       # fc bias
        ]
        scratch_shapes = [
            pltpu.VMEM((tb, d_pad), jnp.float32),                  # pooled sums
        ]
    else:
        kernel = functools.partial(_fasttext_hbm_kernel, seq=seq, tb=tb,
                                   b_pad=b_pad, pad_id=pad_idx)
        in_specs = [
            pl.BlockSpec(memory_space=pl.ANY),                     # table stays in HBM
            pl.BlockSpec((d_pad, o_pad), lambda i, ids: (0, 0)),   # fc weight (bf16)
            pl.BlockSpec((1, o_pad), lambda i, ids: (0, 0)),       # fc bias
        ]
        scratch_shapes = [
            pltpu.VMEM((2, tb, d_pad), jnp.float32),               # 2-slot slab buffer
            pltpu.VMEM((tb, d_pad), jnp.float32),                  # pooled sums
            pltpu.SemaphoreType.DMA((2 * tb,)),                    # per-(slot,row) sems
        ]

    out_p = pl.pallas_call(
        kernel,
        out_shape=jax.ShapeDtypeStruct((b_pad, o_pad), jnp.float32),
        grid_spec=pltpu.PrefetchScalarGridSpec(
            num_scalar_prefetch=1,                                 # ids -> SMEM
            grid=grid,
            in_specs=in_specs,
            out_specs=pl.BlockSpec((tb, o_pad), lambda i, ids: (i, 0)),  # lane-dense
            scratch_shapes=scratch_shapes,
        ),
        compiler_params=pltpu.CompilerParams(
            dimension_semantics=("parallel",),                     # batch tiles -> megacore
        ),
    )(ids_flat, emb_p, w_p, b_p)

    return out_p[:batch, :out_dim]


# --------------------------------------------------------------------------
# Reference + test harness
# --------------------------------------------------------------------------
def init_params(vocab_size, embed_size, output_dim, pad_idx, key):
    """Deterministic synthetic weights matching nn.Embedding / nn.Linear shapes."""
    k_emb, k_w, k_b = jax.random.split(key, 3)
    emb = jax.random.normal(k_emb, (vocab_size, embed_size), jnp.float32)
    emb = emb.at[pad_idx].set(0.0)                       # padding_idx row is zero
    bound = 1.0 / float(jnp.sqrt(jnp.float32(embed_size)))
    w = jax.random.uniform(k_w, (embed_size, output_dim), jnp.float32, -bound, bound)
    b = jax.random.uniform(k_b, (output_dim,), jnp.float32, -bound, bound)
    return {"embedding": emb, "fc_w": w, "fc_b": b}


def fasttext_reference(text, params):
    """Pure-JAX reference of the PyTorch forward (eval mode)."""
    emb = params["embedding"][text]                              # [seq, batch, embed]
    pooled = jnp.mean(jnp.transpose(emb, (1, 0, 2)), axis=1)     # [batch, embed]
    return pooled @ params["fc_w"] + params["fc_b"]


if __name__ == "__main__":
    vocab_size = 64
    embed_size = 32
    output_dim = 8
    pad_idx = 0

    key = jax.random.PRNGKey(0)
    k_params, k_text1, k_text2 = jax.random.split(key, 3)

    params = init_params(vocab_size, embed_size, output_dim, pad_idx, k_params)

    def run_case(k_text, seq_len, batch):
        text = jax.random.randint(k_text, (seq_len, batch), 0, vocab_size,
                                  dtype=jnp.int32)
        text_lengths = jnp.full((batch,), seq_len, dtype=jnp.int32)
        ref = fasttext_reference(text, params)

        # Path A: embedding table resident in VMEM (auto-selected for this vocab).
        out_vmem = jax.block_until_ready(
            fasttext_forward(text, text_lengths, params, pad_idx=pad_idx))
        # Path B: force the HBM-gather / streamed-slab path to exercise it too.
        out_hbm = jax.block_until_ready(
            fasttext_forward(text, text_lengths, params, pad_idx=pad_idx,
                             vmem_table_budget_bytes=0))

        for out in (out_vmem, out_hbm):
            assert out.shape == (batch, output_dim)
            # bf16 MXU matmul -> modest tolerance vs the f32 reference.
            assert jnp.allclose(out, ref, atol=1e-2, rtol=1e-2), (
                f"mismatch vs pure-JAX reference (seq={seq_len}, batch={batch})")

    run_case(k_text1, seq_len=8, batch=4)      # single batch tile
    run_case(k_text2, seq_len=12, batch=20)    # multi-tile grid + padded batch rows

    print("KERNEL_OK")
</pallas_src>

<mosaic_0001>
module attributes {stable_mosaic.version = 11 : i64} {
  func.func @_fasttext_vmem_kernel(%arg0: i32, %arg1: memref<64xi32, #tpu.memory_space<smem>>, %arg2: memref<64x128xf32, #tpu.memory_space<vmem>>, %arg3: memref<128x128xbf16, #tpu.memory_space<vmem>>, %arg4: memref<1x128xf32, #tpu.memory_space<vmem>>, %arg5: memref<8x128xf32, #tpu.memory_space<vmem>>, %arg6: memref<8x128xf32, #tpu.memory_space<vmem>>) attributes {dimension_semantics = [#tpu.dimension_semantics<parallel>], iteration_bounds = array<i64: 1>, scalar_prefetch = 1 : i64, scratch_operands = 1 : i64, tpu.core_type = #tpu.core_type<tc>, window_params = [{pipeline_mode = #tpu.pipeline_mode<synchronous>, transform_indices = @transform_0, window_bounds = array<i64: 64, 128>}, {pipeline_mode = #tpu.pipeline_mode<synchronous>, transform_indices = @transform_1, window_bounds = array<i64: 128, 128>}, {pipeline_mode = #tpu.pipeline_mode<synchronous>, transform_indices = @transform_2, window_bounds = array<i64: 1, 128>}, {transform_indices = @transform_3, window_bounds = array<i64: 8, 128>}]} {
    %c8_i32 = arith.constant 8 : i32
    %0 = arith.muli %arg0, %c8_i32 : i32
    %c0_i32 = arith.constant 0 : i32
    %c8_i32_0 = arith.constant 8 : i32
    %1 = arith.addi %c0_i32, %c8_i32_0 : i32
    %c1_i32 = arith.constant 1 : i32
    scf.for %arg7 = %c0_i32 to %1 step %c1_i32  : i32 {
      %c1_i32_9 = arith.constant 1 : i32
      %10 = arith.muli %arg7, %c1_i32_9 : i32
      %c0_i32_10 = arith.constant 0 : i32
      %11 = arith.addi %c0_i32_10, %10 : i32
      %cst_11 = arith.constant 0.000000e+00 : f32
      %12 = vector.broadcast %cst_11 : f32 to vector<1x128xf32>
      %c0_i32_12 = arith.constant 0 : i32
      %c8_i32_13 = arith.constant 8 : i32
      %13 = arith.addi %c0_i32_12, %c8_i32_13 : i32
      %c1_i32_14 = arith.constant 1 : i32
      %14 = scf.for %arg8 = %c0_i32_12 to %13 step %c1_i32_14 iter_args(%arg9 = %12) -> (vector<1x128xf32>)  : i32 {
        %c8_i32_17 = arith.constant 8 : i32
        %17 = arith.muli %arg8, %c8_i32_17 : i32
        %18 = arith.addi %17, %0 : i32
        %19 = arith.addi %18, %11 : i32
        %20 = arith.index_cast %19 : i32 to index
        %21 = memref.load %arg1[%20] : memref<64xi32, #tpu.memory_space<smem>>
        %22 = arith.index_cast %21 : i32 to index
        %c0_18 = arith.constant 0 : index
        %23 = vector.load %arg2[%22, %c0_18] : memref<64x128xf32, #tpu.memory_space<vmem>>, vector<1x128xf32>
        %24 = arith.addf %arg9, %23 : vector<1x128xf32>
        scf.yield %24 : vector<1x128xf32>
      }
      %c8_i32_15 = arith.constant 8 : i32
      %15 = arith.index_cast %11 : i32 to index
      %c0_16 = arith.constant 0 : index
      %16 = vector.load %arg6[%15, %c0_16] : memref<8x128xf32, #tpu.memory_space<vmem>>, vector<1x128xf32>
      tpu.vector_store %arg6[%15, %c0_16], %14 {strides = array<i32>} : memref<8x128xf32, #tpu.memory_space<vmem>>, vector<1x128xf32>,
    }
    %c8_i32_1 = arith.constant 8 : i32
    %c0 = arith.constant 0 : index
    %c0_2 = arith.constant 0 : index
    %2 = vector.load %arg6[%c0, %c0_2] : memref<8x128xf32, #tpu.memory_space<vmem>>, vector<8x128xf32>
    %3 = arith.truncf %2 : vector<8x128xf32> to vector<8x128xbf16>
    %c0_3 = arith.constant 0 : index
    %c0_4 = arith.constant 0 : index
    %4 = vector.load %arg3[%c0_3, %c0_4] : memref<128x128xbf16, #tpu.memory_space<vmem>>, vector<128x128xbf16>
    %cst = arith.constant dense<0.000000e+00> : vector<8x128xf32>
    %5 = tpu.matmul %3, %4, %cst {dimension_numbers = #tpu.dot_dimension_numbers<[1], [0], [0], [1], [0, 0, 1, 1], [], []>} : vector<8x128xbf16>, vector<128x128xbf16>, vector<8x128xf32> -> vector<8x128xf32>
    %c0_5 = arith.constant 0 : index
    %c0_6 = arith.constant 0 : index
    %6 = vector.load %arg4[%c0_5, %c0_6] : memref<1x128xf32, #tpu.memory_space<vmem>>, vector<1x128xf32>
    %7 = vector.broadcast %6 : vector<1x128xf32> to vector<8x128xf32>
    %8 = arith.addf %5, %7 : vector<8x128xf32>
    %c0_7 = arith.constant 0 : index
    %c0_8 = arith.constant 0 : index
    %9 = vector.load %arg5[%c0_7, %c0_8] : memref<8x128xf32, #tpu.memory_space<vmem>>, vector<8x128xf32>
    tpu.vector_store %arg5[%c0_7, %c0_8], %8 {strides = array<i32>} : memref<8x128xf32, #tpu.memory_space<vmem>>, vector<8x128xf32>,
    return
  }
  func.func @transform_0(%arg0: i32, %arg1: memref<64xi32, #tpu.memory_space<smem>>) -> (i32, i32) {
    %c0_i32 = arith.constant 0 : i32
    %c0_i32_0 = arith.constant 0 : i32
    %c0_i32_1 = arith.constant 0 : i32
    return %c0_i32, %c0_i32_0 : i32, i32
  }
  func.func @transform_1(%arg0: i32, %arg1: memref<64xi32, #tpu.memory_space<smem>>) -> (i32, i32) {
    %c0_i32 = arith.constant 0 : i32
    %c0_i32_0 = arith.constant 0 : i32
    %c0_i32_1 = arith.constant 0 : i32
    return %c0_i32, %c0_i32_0 : i32, i32
  }
  func.func @transform_2(%arg0: i32, %arg1: memref<64xi32, #tpu.memory_space<smem>>) -> (i32, i32) {
    %c0_i32 = arith.constant 0 : i32
    %c0_i32_0 = arith.constant 0 : i32
    %c0_i32_1 = arith.constant 0 : i32
    return %c0_i32, %c0_i32_0 : i32, i32
  }
  func.func @transform_3(%arg0: i32, %arg1: memref<64xi32, #tpu.memory_space<smem>>) -> (i32, i32) {
    %c0_i32 = arith.constant 0 : i32
    %c0_i32_0 = arith.constant 0 : i32
    return %arg0, %c0_i32 : i32, i32
  }
}

</mosaic_0001>

<bundles_post_ra>
// kernel: tpu_custom_call.1
= control target key start
LH: loop header
LB: loop body
LE: loop exit
PB: predicated region body
PF: predicated region fallthrough
CT: control target
= control target key end

     0   :  { %s398_s15 = smov [#allocation4]   ;;  %s448_s0 = inlined_call_operand.hbm [shape: s32[64], index: 0, kind: input, shape index: {}]   ;;  %s449_s1 = inlined_call_operand.hbm [shape: f32[64,128], index: 1, kind: input, shape index: {}]   ;;  %s450_s2 = inlined_call_operand.hbm [shape: bf16[128,128], index: 2, kind: input, shape index: {}]   ;;  %s451_s3 = inlined_call_operand.vmem [shape: f32[1,128], index: 3, kind: input, shape index: {}]   ;;  %s452_s4 = inlined_call_operand.hbm [shape: f32[8,128], index: 4, kind: output, shape index: {}]  }
   0x1   :  { %10 = dma.hbm_to_smem %s448_s0, 16, %s398_s15, [#allocation3] }
   0x2   :  { %378 = dma.done.wait [#allocation3], 16 }
   0x3   :  { %379 = vsyncadd [#allocation3], 4294967280 }
   0x4   :  { %12 = sfence }
   0x5   :  { %13 = vsyncpa [#allocation6], 0 }
   0x6   :  { %14 = vsyncpa [#allocation9], 0 }
   0x7   :  { %15 = vsyncpa [#allocation7], 0  ;;  %s399_s18 = smov [#allocation5]  }
   0x8   :  { %s21_s19 = sshll.u32 %s399_s18, 4  ;;  %s22_s19 = int_to_ptr.vmem [resolvable:$true] %s21_s19 }
   0x9   :  { %s314_s20 = scalar_lea.vmem %s22_s19, 1024  ;;  %p319_p1 = scmp.lt.s32.totalorder %s22_s19, %s22_s19 }
   0xa   :  { %p315_p0 = scmp.ne.s32.totalorder %s22_s19, %s314_s20  ;;  %p320_p2 = scmp.lt.s32.totalorder %s314_s20, %s314_s20 }
   0xc   :  { %p321_p3 = por %p320_p2, %p319_p1 }
   0xe   :  { %p322_p4 = pnand %p321_p3, %p315_p0 }
  0x10   :  { %325 = shalt.err (!%p322_p4)
}
  0x11   :  { %s400_s21 = smov 128   ;;  %s401_s22 = smov 8  }
  0x12   :  { %27 = dma.hbm_to_vmem [thread:$0]  %s449_s1, 1024, %s22_s19, [#allocation6], %s400_s21, %s400_s21, %s401_s22  }
  0x13   :  { %s402_s24 = smov [#allocation8]  }
  0x14   :  { %s33_s25 = sshll.u32 %s402_s24, 4  ;;  %s34_s25 = int_to_ptr.vmem [resolvable:$true] %s33_s25 }
  0x15   :  { %s334_s26 = scalar_lea.vmem %s34_s25, 1024  ;;  %p339_p6 = scmp.lt.s32.totalorder %s34_s25, %s34_s25 }
  0x16   :  { %p335_p5 = scmp.ne.s32.totalorder %s34_s25, %s334_s26  ;;  %p340_p7 = scmp.lt.s32.totalorder %s334_s26, %s334_s26 }
  0x18   :  { %p341_p8 = por %p340_p7, %p339_p6 }
  0x1a   :  { %p342_p9 = pnand %p341_p8, %p335_p5 }
  0x1c   :  { %345 = shalt.err (!%p342_p9)
}
  0x1d   :  { %s403_s27 = smov 64   ;;  %s404_s28 = smov 4  }
  0x1e   :  { %39 = dma.hbm_to_vmem [thread:$0]  %s450_s2, 1024, %s34_s25, [#allocation9], %s403_s27, %s403_s27, %s404_s28  }
  0x1f   :  { %380 = dma.done.wait [#allocation6], 1024  }
  0x20   :  { %381 = vsyncadd [#allocation6], 4294966272 }
  0x21   :  { %382 = dma.done.wait [#allocation9], 1024  }
  0x22   :  { %383 = vsyncadd [#allocation9], 4294966272  ;;  %s386_s1 = smov 0  }
  0x23 LB: > { %v390_v0 = vmov 0.0   ;;  %s394_s5 = smov 0   ;;  %s388_s1 = sphi %s386_s1, %s55_s1  }
  0x24 LB: >> { %s217_s6 = sshll.u32 %s396_s5, 3  ;;  %s61_s5 = sadd.s32 1, %s396_s5   ;;  %s396_s5 = sphi %s394_s5, %s61_s5   ;;  %v392_v0 = vphi %v390_v0, %v391_v0  }
  0x25   : >> { %s65_s7 = sadd.s32 %s388_s1, %s217_s6  ;;  %p58_p10 = scmp.ge.s32.totalorder %s61_s5, 8  }
  0x26   : >> { %s66_s8 = sld [smem:[#allocation4 + %s65_s7]]  ;;  %s70_s2 = scalar_lea.vmem (%p58_p10), [#allocation2], %s388_s1 }
  0x27   : > { %s55_s1 = sadd.s32 (%p58_p10), 1, %s388_s1  }
  0x28   : > { %p52_p11 = scmp.ge.s32.totalorder (%p58_p10), %s55_s1, 8  }
  0x2c   : >> { %s67_s9 = scalar_lea.vmem [#allocation5], %s66_s8  ;;  %60 = sbr.rel (!%p58_p10) target bundleno = 36 (0x24), region = 56 }
  0x2d   : >> { %v68_v1 = vld [vmem:[%s67_s9] sm:$0x1] }
  0x2e   : >> { %v69_v2 = vadd.f32 %v392_v0, %v68_v1  }
  0x30   : >> { %v391_v0 = vmov %v69_v2   ;;  %71 = vst [vmem:[%s70_s2] sm:$0x1] (%p58_p10), %v69_v2 }
  0x31   :  { %54 = sbr.rel (!%p52_p11) target bundleno = 35 (0x23), region = 67  ;;  %v290_v3 = vld [vmem:[#allocation8 + $0x38] sm:$0xff] (%p52_p11)   ;;  %v405_v4 = vmov (%p52_p11), 0.0   ;;  %v291_v5 = vld [vmem:[#allocation8 + $0x30] sm:$0xff] (%p52_p11)   ;;  %vm406_vm0 = vmmov (%p52_p11), 0   ;;  %v292_v6 = vld [vmem:[#allocation8 + $0x28] sm:$0xff] (%p52_p11)  }
  0x32   :  { %236 = vmatprep.subr.bf16.mxu0 (%p52_p11), %v405_v4  ;;  %252 = vmatprep.mubr.msk.bf16.mxu0 (%p52_p11), %vm406_vm0, %v405_v4  ;;  %v293_v7 = vld [vmem:[#allocation8 + $0x20] sm:$0xff] (%p52_p11)   ;;  %v294_v8 = vld [vmem:[#allocation8 + $0x18] sm:$0xff] (%p52_p11)   ;;  %v295_v9 = vld [vmem:[#allocation8 + $0x10] sm:$0xff] (%p52_p11)   ;;  %s407_s12 = smov (%p52_p11), [#allocation10]  }
  0x33   :  { %237 = vmatpush3.bf16.msra.mxu0 (%p52_p11), %v290_v3  ;;  %v296_v10 = vld [vmem:[#allocation8 + $0x8] sm:$0xff] (%p52_p11)   ;;  %v297_v11 = vld [vmem:[#allocation8] sm:$0xff] (%p52_p11)   ;;  %v218_v14 = vld [vmem:[%s451_s3] ss:$0 sm:$0xff] (%p52_p11)  ;;  %s192_s13 = sshll.u32 (%p52_p11), %s407_s12, 4  ;;  %s193_s13 = int_to_ptr.vmem [resolvable:$true] %s192_s13 }
  0x34   :  { %238 = vmatprep.subr.bf16.mxu0 (%p52_p11), %v405_v4  ;;  %s346_s14 = scalar_lea.vmem (%p52_p11), %s193_s13, 128  ;;  %p351_p13 = scmp.lt.s32.totalorder (%p52_p11), %s193_s13, %s193_s13 }
  0x35   :  { %p347_p12 = scmp.ne.s32.totalorder (%p52_p11), %s193_s13, %s346_s14  ;;  %p352_p0 = scmp.lt.s32.totalorder (%p52_p11), %s346_s14, %s346_s14 }
  0x37   :  { %239 = vmatpush3.bf16.msra.mxu0 %v291_v5  ;;  %v72_v12 = vld [vmem:[#allocation2] sm:$0xff]  ;;  %p353_p1 = por %p352_p0, %p351_p13 }
  0x38   :  { %240 = vmatprep.subr.bf16.mxu0 %v405_v4  ;;  %v73_v13 = vpack.c.bf16 %v72_v12, %v72_v12 }
  0x39   :  { %p354_p2 = pnand %p353_p1, %p347_p12 }
  0x3b   :  { %241 = vmatpush3.bf16.msra.mxu0 %v292_v6 }
  0x3c   :  { %242 = vmatprep.subr.bf16.mxu0 %v405_v4 }
  0x3f   :  { %243 = vmatpush3.bf16.msra.mxu0 %v293_v7 }
  0x40   :  { %244 = vmatprep.subr.bf16.mxu0 %v405_v4 }
  0x43   :  { %245 = vmatpush3.bf16.msra.mxu0 %v294_v8 }
  0x44   :  { %246 = vmatprep.subr.bf16.mxu0 %v405_v4 }
  0x47   :  { %247 = vmatpush3.bf16.msra.mxu0 %v295_v9 }
  0x48   :  { %248 = vmatprep.subr.bf16.mxu0 %v405_v4 }
  0x4b   :  { %249 = vmatpush3.bf16.msra.mxu0 %v296_v10 }
  0x4c   :  { %250 = vmatprep.subr.bf16.mxu0 %v405_v4 }
  0x4f   :  { %251 = vmatpush3.bf16.msra.mxu0 %v297_v11 }
  0x52   :  { %253 = vmatmul.mubr.bf16.vlgmr.msra.gmra.mxu0 %v73_v13 }
 0x112   :  { %v179_v15 = vpop.f32.mrf.mxu0 }
 0x113   :  { %v180_v16 = vadd.f32 %v218_v14, %v179_v15 }
 0x114   :  { %v254_v17 = vpop.f32.mrf.mxu0 }
 0x115   :  { %185 = vst [vmem:[#allocation10] sm:$0xff] %v180_v16 }
 0x116   :  { %v182_v18 = vpop.f32.mrf.mxu0 }
 0x117   :  { %357 = shalt.err (!%p354_p2)
}
 0x118   :  { %195 = dma.vmem_to_hbm [thread:$0]  %s193_s13, 128, %s452_s4, [#allocation7]   ;;  %v255_v19 = vpop.f32.mrf.mxu0 }
 0x119   :  { %384 = dma.done.wait [#allocation7], 128  }
 0x11a   :  { %385 = vsyncadd [#allocation7], 4294967168 }
 0x11b   :  { %199 = vsyncpa [#allocation6], 1 }
 0x11c   :  { %200 = vsyncpa [#allocation9], 1 }
 0x11d   :  { %201 = vsyncpa [#allocation7], 1 }

</bundles_post_ra>
